<compile_context>
chip_gen: v7x
topology: tpu7x:2x2x1
jax: 0.10.0
libtpu: 0.0.40
codegen_flags: <defaults>
</compile_context>

<pallas_src>
import functools

import jax
import jax.numpy as jnp
from jax.experimental import pallas as pl
from jax.experimental.pallas import tpu as pltpu

P = 8          # logical batch rows packed per physical (sublane) row
_ALIGN = 16    # row alignment of packed-parameter sections (bf16 sublane tile)


def _round_up(n, m):
    return ((n + m - 1) // m) * m


def _block_diag(w, p):
    """(k, n) -> (p*k, p*n) block-diagonal with p copies of w on the diagonal."""
    return jnp.kron(jnp.eye(p, dtype=w.dtype), w)


def _pack_weights(w2, w5, compute_dtype):
    """Block-diagonal fc2/fc5 weights packed into one VMEM-resident buffer."""
    d_in, h2 = w2.shape
    h4 = w5.shape[1]
    r_w5 = _round_up(P * d_in, _ALIGN)
    rows = _round_up(r_w5 + P * h2, _ALIGN)
    width = max(P * h2, P * h4)

    buf = jnp.zeros((rows, width), compute_dtype)
    buf = buf.at[0:P * d_in, 0:P * h2].set(_block_diag(w2.astype(compute_dtype), P))
    buf = buf.at[r_w5:r_w5 + P * h2, 0:P * h4].set(
        _block_diag(w5.astype(compute_dtype), P))
    return buf, r_w5


def _pack_consts(b2, b5, w6, b6):
    """f32 constants: tiled biases, block-diagonal fc6 weight, b6 row."""
    h2 = b2.size
    h4 = b5.size
    r_b5 = _ALIGN
    r_w6 = 2 * _ALIGN
    r_b6 = _round_up(r_w6 + P * h4, _ALIGN)
    rows = r_b6 + _ALIGN
    width = max(P * h2, P * h4, P)

    w6_bd = _block_diag(w6.reshape(h4, 1).astype(jnp.float32), P)     # (P*h4, P)

    buf = jnp.zeros((rows, width), jnp.float32)
    buf = buf.at[0, 0:P * h2].set(jnp.tile(b2.reshape(-1).astype(jnp.float32), P))
    buf = buf.at[r_b5, 0:P * h4].set(jnp.tile(b5.reshape(-1).astype(jnp.float32), P))
    buf = buf.at[r_w6:r_w6 + P * h4, 0:P].set(w6_bd)
    buf = buf.at[r_b6, 0:P].set(
        jnp.full((P,), jnp.reshape(b6, ()).astype(jnp.float32)))
    return buf, (r_b5, r_w6, r_b6)


def _net_kernel(x_ref, w_ref, c_ref, o_ref, *, d_in, h2, h4,
                r_w5, r_b5, r_w6, r_b6):
    pd_in, ph2, ph4 = P * d_in, P * h2, P * h4

    x = x_ref[...]                                        # (tbr, P*d_in) compute dtype

    # fc2 (block-diagonal) -> f32 accumulate; bias + tanh in f32 (EUP).
    w2 = w_ref[0:pd_in, 0:ph2]
    h = jnp.dot(x, w2, preferred_element_type=jnp.float32)
    h = jnp.tanh(h + c_ref[0:1, 0:ph2])

    # fc5 (block-diagonal) -> f32 accumulate; bias + relu in f32.
    w5 = w_ref[r_w5:r_w5 + ph2, 0:ph4]
    h = jnp.dot(h.astype(w5.dtype), w5, preferred_element_type=jnp.float32)
    h = jnp.maximum(h + c_ref[r_b5:r_b5 + 1, 0:ph4], 0.0)

    # fc6: block-diagonal (P*h4, P) weight -> one logical scalar per packed slot.
    w6 = c_ref[r_w6:r_w6 + ph4, 0:P]
    y = jnp.dot(h, w6, preferred_element_type=jnp.float32)
    o_ref[...] = y + c_ref[r_b6:r_b6 + 1, 0:P]


def net_forward(x, params, *, block_b=8192, compute_dtype=jnp.bfloat16):
    """Pallas forward pass for Net (lstm_active = 0 path). Returns (B, 1) f32."""
    w2, b2, w5, b5, w6, b6 = params
    d_in, h2 = w2.shape
    h4 = w5.shape[1]
    B = x.shape[0]

    # ---- batch tiling ------------------------------------------------------
    # Tile is a multiple of 128 rows; cap at 16384 so the per-step footprint
    # (~0.5 KiB/row of f32 intermediates + double-buffered x) stays well under
    # the default scoped-VMEM limit on v5e (16 MiB) / v6e / v7x (32 MiB).
    block_b = _round_up(max(min(block_b, 16384), 128), 128)
    b_min = _round_up(B, 128)
    tb = min(block_b, b_min)
    if b_min >= 256:
        # Guarantee >= 2 grid steps so the "parallel" axis shards over both
        # v7x TensorCores instead of collapsing to a single step.
        tb = min(tb, _round_up(pl.cdiv(b_min, 2), 128))
    b_pad = _round_up(B, tb)
    n_rows = b_pad // P
    tbr = tb // P

    # ---- pack inputs / parameters ------------------------------------------
    xf = x.astype(jnp.float32)
    if b_pad != B:
        xf = jnp.pad(xf, ((0, b_pad - B), (0, 0)))
    # 8 logical rows per physical row -> lane-dense (K = P*d_in) MXU operand.
    xp = xf.reshape(n_rows, P * d_in).astype(compute_dtype)

    wts, r_w5 = _pack_weights(w2, w5, compute_dtype)
    consts, (r_b5, r_w6, r_b6) = _pack_consts(b2, b5, w6, b6)

    kernel = functools.partial(
        _net_kernel, d_in=d_in, h2=h2, h4=h4,
        r_w5=r_w5, r_b5=r_b5, r_w6=r_w6, r_b6=r_b6)

    cost = pl.CostEstimate(
        flops=2 * n_rows * ((P * d_in) * (P * h2) + (P * h2) * (P * h4) + (P * h4) * P),
        transcendentals=b_pad * h2,
        bytes_accessed=(xp.size * xp.dtype.itemsize
                        + wts.size * wts.dtype.itemsize
                        + consts.size * 4
                        + n_rows * P * 4),
    )

    y = pl.pallas_call(
        kernel,
        out_shape=jax.ShapeDtypeStruct((n_rows, P), jnp.float32),
        grid=(b_pad // tb,),
        in_specs=[
            pl.BlockSpec((tbr, P * d_in), lambda i: (i, 0)),   # x: tiled over batch
            pl.BlockSpec(wts.shape, lambda i: (0, 0)),         # weights: VMEM-resident
            pl.BlockSpec(consts.shape, lambda i: (0, 0)),      # biases + fc6: resident
        ],
        out_specs=pl.BlockSpec((tbr, P), lambda i: (i, 0)),
        compiler_params=pltpu.CompilerParams(
            dimension_semantics=("parallel",),                 # shard batch across TCs
        ),
        cost_estimate=cost,
    )(xp, wts, consts)

    # Padded rows carry garbage (nonzero) values; drop them here.
    return y.reshape(b_pad, 1)[:B]


def init_params(key, input_size, hidden_size):
    """Deterministic parameter init (PyTorch Linear uniform(-1/sqrt(fan_in), ...)).
    Weights stored pre-transposed as (in, out); biases as (1, out)."""
    h2 = hidden_size // 2
    h4 = hidden_size // 4
    ks = jax.random.split(key, 6)

    def lin(kw, kb, fan_in, fan_out):
        bound = 1.0 / jnp.sqrt(jnp.float32(fan_in))
        w = jax.random.uniform(kw, (fan_in, fan_out), jnp.float32, -bound, bound)
        b = jax.random.uniform(kb, (1, fan_out), jnp.float32, -bound, bound)
        return w, b

    w2, b2 = lin(ks[0], ks[1], input_size, h2)   # fc2
    w5, b5 = lin(ks[2], ks[3], h2, h4)           # fc5
    w6, b6 = lin(ks[4], ks[5], h4, 1)            # fc6
    return (w2, b2, w5, b5, w6, b6)


def net_forward_ref(x, params):
    """Pure-JAX reference (highest-precision matmuls) for correctness checking."""
    w2, b2, w5, b5, w6, b6 = params
    hi = jax.lax.Precision.HIGHEST
    h = jnp.tanh(jnp.dot(x, w2, precision=hi) + b2)
    h = jax.nn.relu(jnp.dot(h, w5, precision=hi) + b5)
    return jnp.dot(h, w6, precision=hi) + b6


if __name__ == "__main__":
    key = jax.random.PRNGKey(0)
    k_x, k_p = jax.random.split(key)

    batch = 8
    input_size = 16
    hidden_size = 32

    x = jax.random.normal(k_x, (batch, input_size), jnp.float32)
    params = init_params(k_p, input_size, hidden_size)
    ref = net_forward_ref(x, params)

    # Exact (f32 matmul input) path.
    out_f32 = jax.block_until_ready(
        net_forward(x, params, compute_dtype=jnp.float32))
    assert out_f32.shape == (batch, 1)
    assert jnp.allclose(out_f32, ref, atol=1e-4, rtol=1e-4)

    # Default bf16-matmul-input path (f32 accumulation / elementwise).
    out_bf16 = jax.block_until_ready(net_forward(x, params))
    assert out_bf16.shape == (batch, 1)
    assert jnp.allclose(out_bf16, ref, atol=5e-2, rtol=5e-2)

    # Larger batch: exercises multi-step grid (>= 2 steps for v7x) + padding path.
    x_big = jax.random.normal(k_x, (1000, input_size), jnp.float32)
    out_big = jax.block_until_ready(net_forward(x_big, params))
    ref_big = net_forward_ref(x_big, params)
    assert out_big.shape == (1000, 1)
    assert jnp.allclose(out_big, ref_big, atol=5e-2, rtol=5e-2)

    print("KERNEL_OK")
</pallas_src>

<mosaic_0001>
module attributes {stable_mosaic.version = 11 : i64} {
  func.func @_net_kernel(%arg0: i32, %arg1: memref<16x128xf32, #tpu.memory_space<vmem>>, %arg2: memref<256x128xf32, #tpu.memory_space<vmem>>, %arg3: memref<112x128xf32, #tpu.memory_space<vmem>>, %arg4: memref<16x8xf32, #tpu.memory_space<vmem>>) attributes {dimension_semantics = [#tpu.dimension_semantics<parallel>], iteration_bounds = array<i64: 1>, scalar_prefetch = 0 : i64, scratch_operands = 0 : i64, tpu.core_type = #tpu.core_type<tc>, window_params = [{transform_indices = @transform_0, window_bounds = array<i64: 16, 128>}, {pipeline_mode = #tpu.pipeline_mode<synchronous>, transform_indices = @transform_1, window_bounds = array<i64: 256, 128>}, {pipeline_mode = #tpu.pipeline_mode<synchronous>, transform_indices = @transform_2, window_bounds = array<i64: 112, 128>}, {transform_indices = @transform_3, window_bounds = array<i64: 16, 8>}]} {
    %c0 = arith.constant 0 : index
    %c0_0 = arith.constant 0 : index
    %0 = vector.load %arg1[%c0, %c0_0] : memref<16x128xf32, #tpu.memory_space<vmem>>, vector<16x128xf32>
    %c0_1 = arith.constant 0 : index
    %c0_2 = arith.constant 0 : index
    %1 = vector.load %arg2[%c0_1, %c0_2] : memref<256x128xf32, #tpu.memory_space<vmem>>, vector<128x128xf32>
    %cst = arith.constant dense<0.000000e+00> : vector<16x128xf32>
    %2 = tpu.matmul %0, %1, %cst {dimension_numbers = #tpu.dot_dimension_numbers<[1], [0], [0], [1], [0, 0, 1, 1], [], []>} : vector<16x128xf32>, vector<128x128xf32>, vector<16x128xf32> -> vector<16x128xf32>
    %c0_3 = arith.constant 0 : index
    %c0_4 = arith.constant 0 : index
    %3 = vector.load %arg3[%c0_3, %c0_4] : memref<112x128xf32, #tpu.memory_space<vmem>>, vector<1x128xf32>
    %4 = vector.broadcast %3 : vector<1x128xf32> to vector<16x128xf32>
    %5 = arith.addf %2, %4 : vector<16x128xf32>
    %6 = math.tanh %5 : vector<16x128xf32>
    %c128 = arith.constant 128 : index
    %c0_5 = arith.constant 0 : index
    %7 = vector.load %arg2[%c128, %c0_5] : memref<256x128xf32, #tpu.memory_space<vmem>>, vector<128x64xf32>
    %cst_6 = arith.constant dense<0.000000e+00> : vector<16x64xf32>
    %8 = tpu.matmul %6, %7, %cst_6 {dimension_numbers = #tpu.dot_dimension_numbers<[1], [0], [0], [1], [0, 0, 1, 1], [], []>} : vector<16x128xf32>, vector<128x64xf32>, vector<16x64xf32> -> vector<16x64xf32>
    %c16 = arith.constant 16 : index
    %c0_7 = arith.constant 0 : index
    %9 = vector.load %arg3[%c16, %c0_7] : memref<112x128xf32, #tpu.memory_space<vmem>>, vector<1x64xf32>
    %10 = vector.broadcast %9 : vector<1x64xf32> to vector<16x64xf32>
    %11 = arith.addf %8, %10 : vector<16x64xf32>
    %cst_8 = arith.constant 0.000000e+00 : f32
    %12 = vector.broadcast %cst_8 : f32 to vector<16x64xf32>
    %13 = arith.maximumf %11, %12 : vector<16x64xf32>
    %c32 = arith.constant 32 : index
    %c0_9 = arith.constant 0 : index
    %14 = vector.load %arg3[%c32, %c0_9] : memref<112x128xf32, #tpu.memory_space<vmem>>, vector<64x8xf32>
    %cst_10 = arith.constant dense<0.000000e+00> : vector<16x8xf32>
    %15 = tpu.matmul %13, %14, %cst_10 {dimension_numbers = #tpu.dot_dimension_numbers<[1], [0], [0], [1], [0, 0, 1, 1], [], []>} : vector<16x64xf32>, vector<64x8xf32>, vector<16x8xf32> -> vector<16x8xf32>
    %c96 = arith.constant 96 : index
    %c0_11 = arith.constant 0 : index
    %16 = vector.load %arg3[%c96, %c0_11] : memref<112x128xf32, #tpu.memory_space<vmem>>, vector<1x8xf32>
    %17 = vector.broadcast %16 : vector<1x8xf32> to vector<16x8xf32>
    %18 = arith.addf %15, %17 : vector<16x8xf32>
    %c0_12 = arith.constant 0 : index
    %c0_13 = arith.constant 0 : index
    %19 = vector.load %arg4[%c0_12, %c0_13] : memref<16x8xf32, #tpu.memory_space<vmem>>, vector<16x8xf32>
    tpu.vector_store %arg4[%c0_12, %c0_13], %18 {strides = array<i32>} : memref<16x8xf32, #tpu.memory_space<vmem>>, vector<16x8xf32>,
    return
  }
  func.func @transform_0(%arg0: i32) -> (i32, i32) {
    %c0_i32 = arith.constant 0 : i32
    %c0_i32_0 = arith.constant 0 : i32
    return %arg0, %c0_i32 : i32, i32
  }
  func.func @transform_1(%arg0: i32) -> (i32, i32) {
    %c0_i32 = arith.constant 0 : i32
    %c0_i32_0 = arith.constant 0 : i32
    %c0_i32_1 = arith.constant 0 : i32
    return %c0_i32, %c0_i32_0 : i32, i32
  }
  func.func @transform_2(%arg0: i32) -> (i32, i32) {
    %c0_i32 = arith.constant 0 : i32
    %c0_i32_0 = arith.constant 0 : i32
    %c0_i32_1 = arith.constant 0 : i32
    return %c0_i32, %c0_i32_0 : i32, i32
  }
  func.func @transform_3(%arg0: i32) -> (i32, i32) {
    %c0_i32 = arith.constant 0 : i32
    %c0_i32_0 = arith.constant 0 : i32
    return %arg0, %c0_i32 : i32, i32
  }
}

</mosaic_0001>

<bundles_post_ra>
// kernel: tpu_custom_call.1
= control target key start
LH: loop header
LB: loop body
LE: loop exit
PB: predicated region body
PF: predicated region fallthrough
CT: control target
= control target key end

     0   :  { %8 = vsyncpa [#allocation3], 0  ;;  %s739_s0 = inlined_call_operand.hbm [shape: f32[16,128], index: 0, kind: input, shape index: {}]   ;;  %s740_s1 = inlined_call_operand.hbm [shape: f32[256,128], index: 1, kind: input, shape index: {}]   ;;  %s741_s2 = inlined_call_operand.hbm [shape: f32[112,128], index: 2, kind: input, shape index: {}]   ;;  %s742_s3 = inlined_call_operand.vmem [shape: f32[16,8], index: 3, kind: output, shape index: {}]  }
   0x1   :  { %9 = vsyncpa [#allocation5], 0  ;;  %s656_s12 = smov [#allocation4]   ;;  %s657_s14 = smov [#allocation2]  }
   0x2   :  { %s27_s13 = sshll.u32 %s656_s12, 4  ;;  %s15_s15 = sshll.u32 %s657_s14, 4  ;;  %s28_s13 = int_to_ptr.vmem [resolvable:$true] %s27_s13  ;;  %s681_s15 = int_to_ptr.vmem [resolvable:$true] %s15_s15 }
   0x3   :  { %s586_s18 = scalar_lea.hbm %s740_s1, 4096 }
   0x4   :  { %p587_p0 = scmp.ne.s32.totalorder %s740_s1, %s586_s18  ;;  %p590_p1 = scmp.lt.u32.totalorder %s586_s18, %s740_s1 }
   0x6   :  { %p592_p2 = pnand %p590_p1, %p587_p0 }
   0x8   :  { %595 = shalt.err (!%p592_p2)
}
   0x9   :  { %s596_s23 = scalar_lea.vmem %s28_s13, 4096  ;;  %p601_p4 = scmp.lt.s32.totalorder %s28_s13, %s28_s13 }
   0xa   :  { %p597_p3 = scmp.ne.s32.totalorder %s28_s13, %s596_s23  ;;  %p602_p5 = scmp.lt.s32.totalorder %s596_s23, %s596_s23 }
   0xc   :  { %p603_p6 = por %p602_p5, %p601_p4 }
   0xe   :  { %p604_p7 = pnand %p603_p6, %p597_p3 }
  0x10   :  { %607 = shalt.err (!%p604_p7)
}
  0x11   :  { %s658_s24 = smov 128   ;;  %s659_s25 = smov 8  }
  0x12   :  { %33 = dma.hbm_to_vmem [thread:$0]  %s740_s1, 4096, %s28_s13, [#allocation5], %s658_s24, %s658_s24, %s659_s25  }
  0x13   :  { %s608_s30 = scalar_lea.hbm %s739_s0, 256 }
  0x14   :  { %p609_p8 = scmp.ne.s32.totalorder %s739_s0, %s608_s30  ;;  %p612_p9 = scmp.lt.u32.totalorder %s608_s30, %s739_s0 }
  0x16   :  { %p614_p10 = pnand %p612_p9, %p609_p8 }
  0x18   :  { %617 = shalt.err (!%p614_p10)
}
  0x19   :  { %s618_s8 = scalar_lea.vmem %s681_s15, 256  ;;  %p623_p12 = scmp.lt.s32.totalorder %s681_s15, %s681_s15 }
  0x1a   :  { %p619_p11 = scmp.ne.s32.totalorder %s681_s15, %s618_s8  ;;  %p624_p13 = scmp.lt.s32.totalorder %s618_s8, %s618_s8 }
  0x1c   :  { %p625_p0 = por %p624_p13, %p623_p12 }
  0x1e   :  { %p626_p1 = pnand %p625_p0, %p619_p11 }
  0x20   :  { %629 = shalt.err (!%p626_p1)
}
  0x21   :  { %21 = dma.hbm_to_vmem [thread:$0]  %s739_s0, 256, %s681_s15, [#allocation3], %s658_s24, %s658_s24, %s659_s25  }
  0x22   :  { %s660_s10 = smov [#allocation6]   ;;  %s630_s14 = scalar_lea.hbm %s741_s2, 1792 }
  0x23   :  { %s39_s11 = sshll.u32 %s660_s10, 4  ;;  %p631_p2 = scmp.ne.s32.totalorder %s741_s2, %s630_s14  ;;  %s40_s11 = int_to_ptr.vmem [resolvable:$true] %s39_s11 }
  0x24   :  { %p634_p3 = scmp.lt.u32.totalorder %s630_s14, %s741_s2 }
  0x26   :  { %p636_p4 = pnand %p634_p3, %p631_p2 }
  0x28   :  { %639 = shalt.err (!%p636_p4)
}
  0x29   :  { %s640_s20 = scalar_lea.vmem %s40_s11, 1792  ;;  %p645_p6 = scmp.lt.s32.totalorder %s40_s11, %s40_s11 }
  0x2a   :  { %p641_p5 = scmp.ne.s32.totalorder %s40_s11, %s640_s20  ;;  %p646_p7 = scmp.lt.s32.totalorder %s640_s20, %s640_s20 }
  0x2c   :  { %p647_p8 = por %p646_p7, %p645_p6 }
  0x2e   :  { %p648_p9 = pnand %p647_p8, %p641_p5 }
  0x30   :  { %651 = shalt.err (!%p648_p9)
}
  0x31   :  { %45 = dma.hbm_to_vmem [thread:$0]  %s741_s2, 1792, %s40_s11, [#allocation5], %s658_s24, %s658_s24, %s659_s25  }
  0x32   :  { %652 = dma.done.wait [#allocation3], 256  }
  0x33   :  { %653 = vsyncadd [#allocation3], 4294967040 }
  0x34   :  { %654 = dma.done.wait [#allocation5], 5888  }
  0x35   :  { %655 = vsyncadd [#allocation5], 4294961408  ;;  %v57_v0 = vld [vmem:[#allocation4] sm:$0xff]  ;;  %v58_v1 = vld [vmem:[#allocation4 + $0x8] sm:$0xff]  ;;  %vm266_vm0 = vcmask 523264   ;;  %vm348_vm1 = vcmask 64512  }
  0x36   :  { %v59_v2 = vld [vmem:[#allocation4 + $0x10] sm:$0xff]  ;;  %v497_v3 = vpack.c.bf16 %v58_v1, %v57_v0  ;;  %v60_v4 = vld [vmem:[#allocation4 + $0x18] sm:$0xff]  ;;  %v61_v6 = vld [vmem:[#allocation4 + $0x20] sm:$0xff] }
  0x37   :  { %v501_v5 = vpack.c.bf16 %v60_v4, %v59_v2  ;;  %v62_v7 = vld [vmem:[#allocation4 + $0x28] sm:$0xff]  ;;  %v63_v9 = vld [vmem:[#allocation4 + $0x30] sm:$0xff]  ;;  %v64_v10 = vld [vmem:[#allocation4 + $0x38] sm:$0xff] }
  0x38   :  { %498 = vmatprep.subr.bf16.mxu0 %v497_v3  ;;  %v505_v8 = vpack.c.bf16 %v62_v7, %v61_v6  ;;  %v55_v11 = vld [vmem:[#allocation2] sm:$0xff]  ;;  %v155_v12 = vld [vmem:[#allocation4 + $0x80] sm:$0xff]  ;;  %v156_v13 = vld [vmem:[#allocation4 + $0x88] sm:$0xff]  ;;  %v509_v20 = vpack.c.bf16 %v64_v10, %v63_v9 }
  0x39   :  { %500 = vmatpush3.bf16.msra.mxu0 %v497_v3  ;;  %440 = vmatprep.mubr.f32.mxu0 %v55_v11  ;;  %v157_v14 = vld [vmem:[#allocation4 + $0x90] sm:$0xff]  ;;  %v529_v15 = vpack.c.bf16 %v156_v13, %v155_v12  ;;  %v158_v16 = vld [vmem:[#allocation4 + $0x98] sm:$0xff]  ;;  %v159_v18 = vld [vmem:[#allocation4 + $0xa0] sm:$0xff] }
  0x3a   :  { %502 = vmatprep.subr.bf16.mxu0 %v501_v5  ;;  %v533_v17 = vpack.c.bf16 %v158_v16, %v157_v14  ;;  %v160_v19 = vld [vmem:[#allocation4 + $0xa8] sm:$0xff]  ;;  %v65_v21 = vld [vmem:[#allocation4 + $0x40] sm:$0xff]  ;;  %v161_v24 = vld [vmem:[#allocation4 + $0xb0] sm:$0xff] }
  0x3b   :  { %530 = vmatprep.subr.bf16.mxu1 %v529_v15  ;;  %v66_v22 = vld [vmem:[#allocation4 + $0x48] sm:$0xff]  ;;  %v537_v23 = vpack.c.bf16 %v160_v19, %v159_v18  ;;  %v162_v25 = vld [vmem:[#allocation4 + $0xb8] sm:$0xff]  ;;  %v67_v27 = vld [vmem:[#allocation4 + $0x50] sm:$0xff] }
  0x3c   :  { %532 = vmatpush3.bf16.msra.mxu1 %v529_v15  ;;  %v513_v26 = vpack.c.bf16 %v66_v22, %v65_v21  ;;  %v68_v28 = vld [vmem:[#allocation4 + $0x58] sm:$0xff]  ;;  %v541_v29 = vpack.c.bf16 %v162_v25, %v161_v24  ;;  %v69_v31 = vld [vmem:[#allocation4 + $0x60] sm:$0xff]  ;;  %v70_v32 = vld [vmem:[#allocation4 + $0x68] sm:$0xff] }
  0x3d   :  { %504 = vmatpush3.bf16.msra.mxu0 %v501_v5  ;;  %534 = vmatprep.subr.bf16.mxu1 %v533_v17  ;;  %v517_v30 = vpack.c.bf16 %v68_v28, %v67_v27  ;;  %v521_v33 = vpack.c.bf16 %v70_v32, %v69_v31  ;;  %v71_v34 = vld [vmem:[#allocation4 + $0x70] sm:$0xff]  ;;  %v72_v35 = vld [vmem:[#allocation4 + $0x78] sm:$0xff]  ;;  %v163_v38 = vld [vmem:[#allocation4 + $0xc0] sm:$0xff] }
  0x3e   :  { %506 = vmatprep.subr.bf16.mxu0 %v505_v8  ;;  %v525_v36 = vpack.c.bf16 %v72_v35, %v71_v34  ;;  %v56_v37 = vld [vmem:[#allocation2 + $0x8] sm:$0xff]  ;;  %v164_v39 = vld [vmem:[#allocation4 + $0xc8] sm:$0xff]  ;;  %v165_v41 = vld [vmem:[#allocation4 + $0xd0] sm:$0xff] }
  0x3f   :  { %v545_v40 = vpack.c.bf16 %v164_v39, %v163_v38  ;;  %v166_v42 = vld [vmem:[#allocation4 + $0xd8] sm:$0xff]  ;;  %v167_v44 = vld [vmem:[#allocation4 + $0xe0] sm:$0xff]  ;;  %v168_v45 = vld [vmem:[#allocation4 + $0xe8] sm:$0xff] }
  0x40   :  { %536 = vmatpush3.bf16.msra.mxu1 %v533_v17  ;;  %v549_v43 = vpack.c.bf16 %v166_v42, %v165_v41  ;;  %v169_v46 = vld [vmem:[#allocation4 + $0xf0] sm:$0xff]  ;;  %v553_v47 = vpack.c.bf16 %v168_v45, %v167_v44  ;;  %v170_v48 = vld [vmem:[#allocation4 + $0xf8] sm:$0xff]  ;;  %v253_v50 = vld [vmem:[#allocation6 + $0x20] sm:$0xff] }
  0x41   :  { %508 = vmatpush3.bf16.msra.mxu0 %v505_v8  ;;  %538 = vmatprep.subr.bf16.mxu1 %v537_v23  ;;  %v557_v49 = vpack.c.bf16 %v170_v48, %v169_v46  ;;  %v254_v51 = vld [vmem:[#allocation6 + $0x28] sm:$0xff]  ;;  %v255_v52 = vld [vmem:[#allocation6 + $0x30] sm:$0xff]  ;;  %v256_v54 = vld [vmem:[#allocation6 + $0x38] sm:$0xff] }
  0x42   :  { %510 = vmatprep.subr.bf16.mxu0 %v509_v20  ;;  %v561_v53 = vpack.c.bf16 %v254_v51, %v253_v50  ;;  %v565_v55 = vpack.c.bf16 %v256_v54, %v255_v52  ;;  %v257_v56 = vld [vmem:[#allocation6 + $0x40] sm:$0xff]  ;;  %v258_v57 = vld [vmem:[#allocation6 + $0x48] sm:$0xff]  ;;  %v259_v2 = vld [vmem:[#allocation6 + $0x50] sm:$0xff] }
  0x43   :  { %v569_v58 = vpack.c.bf16 %v258_v57, %v257_v56  ;;  %v357_v59 = vld [vmem:[#allocation6] ss:$0 sm:$0xff]  ;;  %v260_v3 = vld [vmem:[#allocation6 + $0x58] sm:$0xff]  ;;  %v358_v5 = vld [vmem:[#allocation6 + $0x10] ss:$0 sm:$0xff] }
  0x44   :  { %540 = vmatpush3.bf16.msra.mxu1 %v537_v23  ;;  %v573_v4 = vpack.c.bf16 %v260_v3, %v259_v2  ;;  %v359_v12 = vld [vmem:[#allocation6 + $0x60] ss:$0 sm:$0xff] }
  0x45   :  { %512 = vmatpush3.bf16.msra.mxu0 %v509_v20  ;;  %542 = vmatprep.subr.bf16.mxu1 %v541_v29 }
  0x46   :  { %514 = vmatprep.subr.bf16.mxu0 %v513_v26 }
  0x48   :  { %544 = vmatpush3.bf16.msra.mxu1 %v541_v29 }
  0x49   :  { %516 = vmatpush3.bf16.msra.mxu0 %v513_v26  ;;  %546 = vmatprep.subr.bf16.mxu1 %v545_v40 }
  0x4a   :  { %518 = vmatprep.subr.bf16.mxu0 %v517_v30 }
  0x4c   :  { %548 = vmatpush3.bf16.msra.mxu1 %v545_v40 }
  0x4d   :  { %520 = vmatpush3.bf16.msra.mxu0 %v517_v30  ;;  %550 = vmatprep.subr.bf16.mxu1 %v549_v43 }
  0x4e   :  { %522 = vmatprep.subr.bf16.mxu0 %v521_v33 }
  0x50   :  { %552 = vmatpush3.bf16.msra.mxu1 %v549_v43 }
  0x51   :  { %524 = vmatpush3.bf16.msra.mxu0 %v521_v33  ;;  %554 = vmatprep.subr.bf16.mxu1 %v553_v47 }
  0x52   :  { %526 = vmatprep.subr.bf16.mxu0 %v525_v36 }
  0x54   :  { %556 = vmatpush3.bf16.msra.mxu1 %v553_v47 }
  0x55   :  { %528 = vmatpush3.bf16.msra.mxu0 %v525_v36  ;;  %558 = vmatprep.subr.bf16.mxu1 %v557_v49 }
  0x56   :  { %562 = vmatprep.subr.bf16.mxu0 %v561_v53 }
  0x58   :  { %441 = vmatmul.mubr.f32.vlgmr.msra.gmra.mrb[0].mxu0 %v56_v37  ;;  %560 = vmatpush3.bf16.msra.mxu1 %v557_v49 }
  0x59   :  { %564 = vmatpush3.bf16.msra.mxu0 %v561_v53 }
  0x5a   :  { %566 = vmatprep.subr.bf16.mxu0 %v565_v55 }
  0x5d   :  { %568 = vmatpush3.bf16.msra.mxu0 %v565_v55 }
  0x5e   :  { %570 = vmatprep.subr.bf16.mxu0 %v569_v58 }
  0x61   :  { %572 = vmatpush3.bf16.msra.mxu0 %v569_v58 }
  0x62   :  { %574 = vmatprep.subr.bf16.mxu0 %v573_v4 }
  0x65   :  { %576 = vmatpush3.bf16.msra.mxu0 %v573_v4 }
 0x12b   :  { %v442_v60 = vpop.f32.mrb[0].mxu0 }
 0x12c   :  { %v150_v61 = vadd.f32 %v442_v60, %v357_v59  ;;  %v144_v62 = vpop.f32.mrb[1].mxu0 }
 0x12d   :  { %v145_v63 = vadd.f32 %v357_v59, %v144_v62 }
 0x12f   :  { %582 = vtanh.f32 %v145_v63 }
 0x130   :  { %584 = vtanh.f32 %v150_v61 }
 0x139   :  { %v583_v0 = vpop.eup %582 }
 0x13a   :  { %v585_v1 = vpop.eup %584  ;;  %475 = vmatprep.mubr.f32.mxu1 %v583_v0 }
 0x13b   :  { %476 = vmatmul.mubr.f32.vlgmr.msra.gmra.mrb[0].mxu1 %v585_v1 }
 0x20e   :  { %v477_v6 = vpop.f32.mrb[0].mxu1 }
 0x20f   :  { %v248_v7 = vadd.f32 %v477_v6, %v358_v5  ;;  %v242_v8 = vpop.f32.mrb[1].mxu1 }
 0x210   :  { %v243_v9 = vadd.f32 %v358_v5, %v242_v8 }
 0x211   :  { %v252_v11 = vmax.f32 %v248_v7, 0.0 }
 0x212   :  { %v251_v10 = vmax.f32 %v243_v9, 0.0 }
 0x214   :  { %494 = vmatprep.mubr.msk.f32.mxu0 %vm266_vm0, %v251_v10 }
 0x215   :  { %495 = vmatmul.mubr.msk.f32.vlgmr.msra.gmra.mrb[2].mxu0 %vm266_vm0, %v252_v11 }
 0x2e8   :  { %v496_v13 = vpop.f32.mrb[2].mxu0 }
 0x2e9   :  { %v345_v14 = vadd.f32 %v496_v13, %v359_v12  ;;  %v339_v15 = vpop.f32.mrb[3].mxu0 }
 0x2ea   :  { %v340_v16 = vadd.f32 %v359_v12, %v339_v15 }
 0x2eb   :  { %350 = vst.msk [vmem:[%s742_s3 + $0x8] sm:$0xff] %vm348_vm1, %v345_v14 }
 0x2ec   :  { %349 = vst.msk [vmem:[%s742_s3] sm:$0xff] %vm348_vm1, %v340_v16 }
 0x2ed   :  { %355 = vsyncpa [#allocation3], 1 }
 0x2ee   :  { %356 = vsyncpa [#allocation5], 1 }

</bundles_post_ra>
